<compile_context>
chip_gen: v7x
topology: tpu7x:2x2x1
jax: 0.10.0
libtpu: 0.0.40
codegen_flags: <defaults>
</compile_context>

<pallas_src>
import jax
import jax.numpy as jnp
import numpy as np
from jax.experimental import pallas as pl
from jax.experimental.pallas import tpu as pltpu


def attn_decoder_kernel(
    x_ref,      # (1, B, O)    input for this timestep
    enc_ref,    # (B, L, H)    encoder outputs (resident)
    h0_ref,     # (B, H)       initial hidden
    c0_ref,     # (B, H)       initial cell
    watt_ref,   # (2H+O+1, L)  rows: [W_attn_h ; W_attn_c ; W_attn_x ; b_attn]
    wcomb_ref,  # (H+O+1, H)   rows: [W_comb_applied ; W_comb_x ; b_comb]
    wlstm_ref,  # (4, 2H+1, H) per gate g: rows [W_ih_g ; W_hh_g ; b_g]
    wout_ref,   # (H+1, O)     rows: [W_out ; b_out]
    out_ref,    # (1, B, O)
    attw_ref,   # (1, B, L)
    hout_ref,   # (B, H)
    cout_ref,   # (B, H)
    h_scr,      # (B, H) VMEM carry across grid steps
    c_scr,      # (B, H) VMEM carry across grid steps
):
    t = pl.program_id(0)
    H = h0_ref.shape[1]
    O = x_ref.shape[2]

    @pl.when(t == 0)
    def _():
        h_scr[...] = h0_ref[...]
        c_scr[...] = c0_ref[...]

    x = x_ref[0]         # (B, O)
    h = h_scr[...]       # (B, H)
    c = c_scr[...]       # (B, H)
    enc = enc_ref[...]   # (B, L, H)

    # ---- attention logits: Linear(cat([x, h, c], 1)) -> (B, L) ----
    watt = watt_ref[...]
    logits = (jnp.dot(h, watt[0:H], preferred_element_type=jnp.float32)
              + jnp.dot(c, watt[H:2 * H], preferred_element_type=jnp.float32)
              + watt[2 * H + O:2 * H + O + 1, :])               # bias row
    for o in range(O):   # O is tiny (default 1): rank-2 broadcast, no K=1 matmul
        logits = logits + x[:, o:o + 1] * watt[2 * H + o:2 * H + o + 1, :]

    # ---- softmax over the seq dim ----
    m = jnp.max(logits, axis=1, keepdims=True)
    e = jnp.exp(logits - m)
    attn_w = e / jnp.sum(e, axis=1, keepdims=True)               # (B, L)
    attw_ref[0] = attn_w

    # ---- bmm: (B,1,L) x (B,L,H) -> (B,H) ----
    attn_applied = jnp.sum(attn_w[:, :, None] * enc, axis=1)     # (B, H)

    # ---- attn_combine: Linear(cat([x, attn_applied], 1)), then relu ----
    wcomb = wcomb_ref[...]
    comb = (jnp.dot(attn_applied, wcomb[0:H], preferred_element_type=jnp.float32)
            + wcomb[H + O:H + O + 1, :])                         # bias row
    for o in range(O):
        comb = comb + x[:, o:o + 1] * wcomb[H + o:H + o + 1, :]
    lstm_in = jnp.maximum(comb, 0.0)     # dropout1 is identity in eval mode

    # ---- single-step LSTM, per-gate weights (PyTorch gate order i, f, g, o) ----
    wlstm = wlstm_ref[...]

    def gate_pre(g):
        wg = wlstm[g]                    # (2H+1, H)
        return (jnp.dot(lstm_in, wg[0:H], preferred_element_type=jnp.float32)
                + jnp.dot(h, wg[H:2 * H], preferred_element_type=jnp.float32)
                + wg[2 * H:2 * H + 1, :])

    i_g = jax.nn.sigmoid(gate_pre(0))
    f_g = jax.nn.sigmoid(gate_pre(1))
    g_g = jnp.tanh(gate_pre(2))
    o_g = jax.nn.sigmoid(gate_pre(3))
    c_new = f_g * c + i_g * g_g
    h_new = o_g * jnp.tanh(c_new)        # dropout2 is identity in eval mode

    h_scr[...] = h_new
    c_scr[...] = c_new
    hout_ref[...] = h_new
    cout_ref[...] = c_new

    # ---- output projection: (B,H) @ (H,O) + b ----
    wout = wout_ref[...]
    out_ref[0] = (jnp.dot(h_new, wout[0:H], preferred_element_type=jnp.float32)
                  + wout[H:H + 1, :])


def init_params(key, hidden_size, output_size, x_seq_length):
    """Deterministic parameter init matching the module's layer shapes."""
    H, O, L = hidden_size, output_size, x_seq_length
    ks = jax.random.split(key, 10)

    def u(k, shape, scale):
        return jax.random.uniform(k, shape, jnp.float32, -scale, scale)

    kA = 1.0 / np.sqrt(2 * H + O)
    kC = 1.0 / np.sqrt(H + O)
    kL = 1.0 / np.sqrt(H)
    return dict(
        W_attn=u(ks[0], (L, 2 * H + O), kA), b_attn=u(ks[1], (L,), kA),
        W_comb=u(ks[2], (H, H + O), kC),     b_comb=u(ks[3], (H,), kC),
        W_ih=u(ks[4], (4 * H, H), kL),       W_hh=u(ks[5], (4 * H, H), kL),
        b_ih=u(ks[6], (4 * H,), kL),         b_hh=u(ks[7], (4 * H,), kL),
        W_out=u(ks[8], (O, H), kL),          b_out=u(ks[9], (O,), kL),
    )


def prepare_params(params, hidden_size, output_size):
    """One-time weight packing / transposition (hoisted out of the per-step path)."""
    H, O = hidden_size, output_size
    W_attn, b_attn = params["W_attn"], params["b_attn"]      # (L, O+2H), (L,)
    L = W_attn.shape[0]
    watt = jnp.concatenate([
        W_attn[:, O:O + H].T,        # h rows   (H, L)
        W_attn[:, O + H:].T,         # c rows   (H, L)
        W_attn[:, :O].T,             # x rows   (O, L)
        b_attn.reshape(1, L),        # bias row
    ], axis=0).astype(jnp.float32)

    W_comb, b_comb = params["W_comb"], params["b_comb"]      # (H, O+H), (H,)
    wcomb = jnp.concatenate([
        W_comb[:, O:].T,             # attn_applied rows (H, H)
        W_comb[:, :O].T,             # x rows            (O, H)
        b_comb.reshape(1, H),        # bias row
    ], axis=0).astype(jnp.float32)

    W_ih, W_hh = params["W_ih"], params["W_hh"]              # (4H, H) each
    b_l = params["b_ih"] + params["b_hh"]                    # (4H,)
    gates = []
    for g in range(4):               # PyTorch gate order: i, f, g, o
        rows = slice(g * H, (g + 1) * H)
        gates.append(jnp.concatenate([
            W_ih[rows].T,            # (H, H) lstm-input part
            W_hh[rows].T,            # (H, H) hidden part
            b_l[rows].reshape(1, H),
        ], axis=0))
    wlstm = jnp.stack(gates, axis=0).astype(jnp.float32)      # (4, 2H+1, H)

    wout = jnp.concatenate([
        params["W_out"].T,           # (H, O)
        params["b_out"].reshape(1, O),
    ], axis=0).astype(jnp.float32)

    return dict(watt=watt, wcomb=wcomb, wlstm=wlstm, wout=wout)


def _resident(shape):
    n = len(shape)
    return pl.BlockSpec(shape, lambda t, n=n: (0,) * n)


@jax.jit
def attn_decoder_decode(x_seq, h0, c0, enc, packed):
    """Run all T decoder timesteps inside ONE pallas_call (grid over time).

    x_seq: (T, B, O) teacher-forced inputs; h0/c0: (B, H); enc: (B, L, H).
    Returns (out_seq (T,B,O), attw_seq (T,B,L), h_T (B,H), c_T (B,H)).
    """
    T, B, O = x_seq.shape
    H = h0.shape[1]
    L = enc.shape[1]
    watt, wcomb, wlstm, wout = (packed["watt"], packed["wcomb"],
                                packed["wlstm"], packed["wout"])

    return pl.pallas_call(
        attn_decoder_kernel,
        grid=(T,),
        in_specs=[
            pl.BlockSpec((1, B, O), lambda t: (t, 0, 0)),    # x for step t
            _resident((B, L, H)),                            # enc (fetched once)
            _resident((B, H)), _resident((B, H)),            # h0, c0
            _resident(watt.shape), _resident(wcomb.shape),   # packed weights,
            _resident(wlstm.shape), _resident(wout.shape),   # fetched once
        ],
        out_specs=(
            pl.BlockSpec((1, B, O), lambda t: (t, 0, 0)),
            pl.BlockSpec((1, B, L), lambda t: (t, 0, 0)),
            _resident((B, H)),
            _resident((B, H)),
        ),
        out_shape=(
            jax.ShapeDtypeStruct((T, B, O), jnp.float32),
            jax.ShapeDtypeStruct((T, B, L), jnp.float32),
            jax.ShapeDtypeStruct((B, H), jnp.float32),
            jax.ShapeDtypeStruct((B, H), jnp.float32),
        ),
        scratch_shapes=[pltpu.VMEM((B, H), jnp.float32),
                        pltpu.VMEM((B, H), jnp.float32)],
        compiler_params=pltpu.CompilerParams(
            dimension_semantics=("arbitrary",)),   # h/c carried step-to-step
    )(x_seq, enc, h0, c0, watt, wcomb, wlstm, wout)


def attn_decoder_forward(x, h, c, enc, packed):
    """Module-parity single decoder step (the T=1 case of the fused kernel)."""
    B, O = x.shape
    L = enc.shape[1]
    out_seq, attw_seq, h_new, c_new = attn_decoder_decode(x[None], h, c, enc, packed)
    # PyTorch returns attn_weights with unsqueeze(1): (B, 1, L)
    return out_seq[0], h_new, c_new, attw_seq[0].reshape(B, 1, L)


def reference_forward(x, h, c, enc, p):
    """Pure-JAX reference mirroring the PyTorch forward (eval mode)."""
    H = h.shape[1]
    cat = jnp.concatenate([x, h, c], axis=1)
    logits = cat @ p["W_attn"].T + p["b_attn"]
    aw = jax.nn.softmax(logits, axis=1)
    applied = jnp.einsum("bl,blh->bh", aw, enc)
    comb = jnp.concatenate([x, applied], axis=1) @ p["W_comb"].T + p["b_comb"]
    li = jax.nn.relu(comb)
    gates = li @ p["W_ih"].T + p["b_ih"] + h @ p["W_hh"].T + p["b_hh"]
    i = jax.nn.sigmoid(gates[:, :H])
    f = jax.nn.sigmoid(gates[:, H:2 * H])
    g = jnp.tanh(gates[:, 2 * H:3 * H])
    o = jax.nn.sigmoid(gates[:, 3 * H:])
    cn = f * c + i * g
    hn = o * jnp.tanh(cn)
    out = hn @ p["W_out"].T + p["b_out"]
    return out, hn, cn, aw[:, None, :]


if __name__ == "__main__":
    B, H, L, O, T = 4, 32, 6, 1, 5   # batch, hidden, x_seq_length, output, decode steps

    key = jax.random.PRNGKey(0)
    k_in, k_h, k_c, k_enc, k_p, k_seq = jax.random.split(key, 6)
    x = jax.random.normal(k_in, (B, O), jnp.float32)        # input (target)
    h = jax.random.normal(k_h, (B, H), jnp.float32)         # hidden
    c = jax.random.normal(k_c, (B, H), jnp.float32)         # cell
    enc = jax.random.normal(k_enc, (B, L, H), jnp.float32)  # encoder_outputs
    x_seq = jax.random.normal(k_seq, (T, B, O), jnp.float32)

    params = init_params(k_p, H, O, L)
    packed = prepare_params(params, H, O)   # one-time weight prep (hoisted glue)

    # --- single decoder step: parity with the PyTorch module forward ---
    got = jax.block_until_ready(attn_decoder_forward(x, h, c, enc, packed))
    want = reference_forward(x, h, c, enc, params)
    for g_, w_ in zip(got, want):
        np.testing.assert_allclose(np.asarray(g_), np.asarray(w_),
                                   rtol=2e-4, atol=2e-4)

    # --- fused multi-step decode: one pallas_call for all T steps ---
    out_seq, attw_seq, h_T, c_T = jax.block_until_ready(
        attn_decoder_decode(x_seq, h, c, enc, packed))
    h_r, c_r = h, c
    for t in range(T):
        o_r, h_r, c_r, aw_r = reference_forward(x_seq[t], h_r, c_r, enc, params)
        np.testing.assert_allclose(np.asarray(out_seq[t]), np.asarray(o_r),
                                   rtol=2e-4, atol=2e-4)
        np.testing.assert_allclose(np.asarray(attw_seq[t]), np.asarray(aw_r[:, 0, :]),
                                   rtol=2e-4, atol=2e-4)
    np.testing.assert_allclose(np.asarray(h_T), np.asarray(h_r), rtol=2e-4, atol=2e-4)
    np.testing.assert_allclose(np.asarray(c_T), np.asarray(c_r), rtol=2e-4, atol=2e-4)

    print("KERNEL_OK")
</pallas_src>

<mosaic_0001>
module attributes {stable_mosaic.version = 11 : i64} {
  func.func @attn_decoder_kernel(%arg0: i32, %arg1: memref<1x4x1xf32, #tpu.memory_space<vmem>>, %arg2: memref<4x6x32xf32, #tpu.memory_space<vmem>>, %arg3: memref<4x32xf32, #tpu.memory_space<vmem>>, %arg4: memref<4x32xf32, #tpu.memory_space<vmem>>, %arg5: memref<66x6xf32, #tpu.memory_space<vmem>>, %arg6: memref<34x32xf32, #tpu.memory_space<vmem>>, %arg7: memref<4x65x32xf32, #tpu.memory_space<vmem>>, %arg8: memref<33x1xf32, #tpu.memory_space<vmem>>, %arg9: memref<1x4x1xf32, #tpu.memory_space<vmem>>, %arg10: memref<1x4x6xf32, #tpu.memory_space<vmem>>, %arg11: memref<4x32xf32, #tpu.memory_space<vmem>>, %arg12: memref<4x32xf32, #tpu.memory_space<vmem>>, %arg13: memref<4x32xf32, #tpu.memory_space<vmem>>, %arg14: memref<4x32xf32, #tpu.memory_space<vmem>>) attributes {dimension_semantics = [#tpu.dimension_semantics<arbitrary>], iteration_bounds = array<i64: 1>, scalar_prefetch = 0 : i64, scratch_operands = 2 : i64, tpu.core_type = #tpu.core_type<tc>, window_params = [{transform_indices = @transform_0, window_bounds = array<i64: 1, 4, 1>}, {pipeline_mode = #tpu.pipeline_mode<synchronous>, transform_indices = @transform_1, window_bounds = array<i64: 4, 6, 32>}, {pipeline_mode = #tpu.pipeline_mode<synchronous>, transform_indices = @transform_2, window_bounds = array<i64: 4, 32>}, {pipeline_mode = #tpu.pipeline_mode<synchronous>, transform_indices = @transform_3, window_bounds = array<i64: 4, 32>}, {pipeline_mode = #tpu.pipeline_mode<synchronous>, transform_indices = @transform_4, window_bounds = array<i64: 66, 6>}, {pipeline_mode = #tpu.pipeline_mode<synchronous>, transform_indices = @transform_5, window_bounds = array<i64: 34, 32>}, {pipeline_mode = #tpu.pipeline_mode<synchronous>, transform_indices = @transform_6, window_bounds = array<i64: 4, 65, 32>}, {pipeline_mode = #tpu.pipeline_mode<synchronous>, transform_indices = @transform_7, window_bounds = array<i64: 33, 1>}, {transform_indices = @transform_8, window_bounds = array<i64: 1, 4, 1>}, {transform_indices = @transform_9, window_bounds = array<i64: 1, 4, 6>}, {pipeline_mode = #tpu.pipeline_mode<synchronous>, transform_indices = @transform_10, window_bounds = array<i64: 4, 32>}, {pipeline_mode = #tpu.pipeline_mode<synchronous>, transform_indices = @transform_11, window_bounds = array<i64: 4, 32>}]} {
    %c0_i32 = arith.constant 0 : i32
    %0 = arith.cmpi eq, %arg0, %c0_i32 : i32
    %1 = arith.extui %0 : i1 to i32
    %c0_i32_0 = arith.constant 0 : i32
    %2 = arith.cmpi ne, %1, %c0_i32_0 : i32
    scf.if %2 {
      %c0_51 = arith.constant 0 : index
      %c0_52 = arith.constant 0 : index
      %126 = vector.load %arg3[%c0_51, %c0_52] : memref<4x32xf32, #tpu.memory_space<vmem>>, vector<4x32xf32>
      %c0_53 = arith.constant 0 : index
      %c0_54 = arith.constant 0 : index
      %127 = vector.load %arg13[%c0_53, %c0_54] : memref<4x32xf32, #tpu.memory_space<vmem>>, vector<4x32xf32>
      tpu.vector_store %arg13[%c0_53, %c0_54], %126 {strides = array<i32>} : memref<4x32xf32, #tpu.memory_space<vmem>>, vector<4x32xf32>,
      %c0_55 = arith.constant 0 : index
      %c0_56 = arith.constant 0 : index
      %128 = vector.load %arg4[%c0_55, %c0_56] : memref<4x32xf32, #tpu.memory_space<vmem>>, vector<4x32xf32>
      %c0_57 = arith.constant 0 : index
      %c0_58 = arith.constant 0 : index
      %129 = vector.load %arg14[%c0_57, %c0_58] : memref<4x32xf32, #tpu.memory_space<vmem>>, vector<4x32xf32>
      tpu.vector_store %arg14[%c0_57, %c0_58], %128 {strides = array<i32>} : memref<4x32xf32, #tpu.memory_space<vmem>>, vector<4x32xf32>,
    } else {
    }
    %c0 = arith.constant 0 : index
    %c0_1 = arith.constant 0 : index
    %c0_2 = arith.constant 0 : index
    %3 = vector.load %arg1[%c0, %c0_1, %c0_2] : memref<1x4x1xf32, #tpu.memory_space<vmem>>, vector<1x4x1xf32>
    %4 = vector.shape_cast %3 : vector<1x4x1xf32> to vector<4x1xf32>
    %c0_3 = arith.constant 0 : index
    %c0_4 = arith.constant 0 : index
    %5 = vector.load %arg13[%c0_3, %c0_4] : memref<4x32xf32, #tpu.memory_space<vmem>>, vector<4x32xf32>
    %c0_5 = arith.constant 0 : index
    %c0_6 = arith.constant 0 : index
    %6 = vector.load %arg14[%c0_5, %c0_6] : memref<4x32xf32, #tpu.memory_space<vmem>>, vector<4x32xf32>
    %c0_7 = arith.constant 0 : index
    %c0_8 = arith.constant 0 : index
    %c0_9 = arith.constant 0 : index
    %7 = vector.load %arg2[%c0_7, %c0_8, %c0_9] : memref<4x6x32xf32, #tpu.memory_space<vmem>>, vector<4x6x32xf32>
    %c0_10 = arith.constant 0 : index
    %c0_11 = arith.constant 0 : index
    %8 = vector.load %arg5[%c0_10, %c0_11] : memref<66x6xf32, #tpu.memory_space<vmem>>, vector<66x6xf32>
    %9 = vector.extract_strided_slice %8 {offsets = [0, 0], sizes = [32, 6], strides = [1, 1]} : vector<66x6xf32> to vector<32x6xf32>
    %cst = arith.constant dense<0.000000e+00> : vector<4x6xf32>
    %10 = tpu.matmul %5, %9, %cst {dimension_numbers = #tpu.dot_dimension_numbers<[1], [0], [0], [1], [0, 0, 1, 1], [], []>} : vector<4x32xf32>, vector<32x6xf32>, vector<4x6xf32> -> vector<4x6xf32>
    %11 = vector.extract_strided_slice %8 {offsets = [32, 0], sizes = [32, 6], strides = [1, 1]} : vector<66x6xf32> to vector<32x6xf32>
    %cst_12 = arith.constant dense<0.000000e+00> : vector<4x6xf32>
    %12 = tpu.matmul %6, %11, %cst_12 {dimension_numbers = #tpu.dot_dimension_numbers<[1], [0], [0], [1], [0, 0, 1, 1], [], []>} : vector<4x32xf32>, vector<32x6xf32>, vector<4x6xf32> -> vector<4x6xf32>
    %13 = arith.addf %10, %12 : vector<4x6xf32>
    %14 = vector.extract_strided_slice %8 {offsets = [65, 0], sizes = [1, 6], strides = [1, 1]} : vector<66x6xf32> to vector<1x6xf32>
    %15 = vector.broadcast %14 : vector<1x6xf32> to vector<4x6xf32>
    %16 = arith.addf %13, %15 : vector<4x6xf32>
    %17 = vector.extract_strided_slice %8 {offsets = [64, 0], sizes = [1, 6], strides = [1, 1]} : vector<66x6xf32> to vector<1x6xf32>
    %18 = vector.broadcast %4 : vector<4x1xf32> to vector<4x6xf32>
    %19 = vector.broadcast %17 : vector<1x6xf32> to vector<4x6xf32>
    %20 = arith.mulf %18, %19 : vector<4x6xf32>
    %21 = arith.addf %16, %20 : vector<4x6xf32>
    %cst_13 = arith.constant dense<0xFF800000> : vector<4xf32>
    %22 = vector.multi_reduction <maximumf>, %21, %cst_13 [1] : vector<4x6xf32> to vector<4xf32>
    %23 = vector.shape_cast %22 : vector<4xf32> to vector<4x1xf32>
    %24 = vector.broadcast %23 : vector<4x1xf32> to vector<4x6xf32>
    %25 = arith.subf %21, %24 : vector<4x6xf32>
    %26 = math.exp %25 : vector<4x6xf32>
    %cst_14 = arith.constant dense<0.000000e+00> : vector<4xf32>
    %27 = vector.multi_reduction <add>, %26, %cst_14 [1] : vector<4x6xf32> to vector<4xf32>
    %28 = vector.shape_cast %27 : vector<4xf32> to vector<4x1xf32>
    %29 = vector.broadcast %28 : vector<4x1xf32> to vector<4x6xf32>
    %30 = arith.divf %26, %29 : vector<4x6xf32>
    %c0_15 = arith.constant 0 : index
    %c0_16 = arith.constant 0 : index
    %c0_17 = arith.constant 0 : index
    %31 = vector.load %arg10[%c0_15, %c0_16, %c0_17] : memref<1x4x6xf32, #tpu.memory_space<vmem>>, vector<1x4x6xf32>
    %32 = vector.shape_cast %31 : vector<1x4x6xf32> to vector<4x6xf32>
    %33 = vector.shape_cast %30 : vector<4x6xf32> to vector<1x4x6xf32>
    tpu.vector_store %arg10[%c0_15, %c0_16, %c0_17], %33 {strides = array<i32>} : memref<1x4x6xf32, #tpu.memory_space<vmem>>, vector<1x4x6xf32>,
    %34 = vector.shape_cast %30 : vector<4x6xf32> to vector<4x6x1xf32>
    %35 = vector.broadcast %34 : vector<4x6x1xf32> to vector<4x6x32xf32>
    %36 = arith.mulf %35, %7 : vector<4x6x32xf32>
    %cst_18 = arith.constant dense<0.000000e+00> : vector<4x32xf32>
    %37 = vector.multi_reduction <add>, %36, %cst_18 [1] : vector<4x6x32xf32> to vector<4x32xf32>
    %c0_19 = arith.constant 0 : index
    %c0_20 = arith.constant 0 : index
    %38 = vector.load %arg6[%c0_19, %c0_20] : memref<34x32xf32, #tpu.memory_space<vmem>>, vector<34x32xf32>
    %39 = vector.extract_strided_slice %38 {offsets = [0, 0], sizes = [32, 32], strides = [1, 1]} : vector<34x32xf32> to vector<32x32xf32>
    %cst_21 = arith.constant dense<0.000000e+00> : vector<4x32xf32>
    %40 = tpu.matmul %37, %39, %cst_21 {dimension_numbers = #tpu.dot_dimension_numbers<[1], [0], [0], [1], [0, 0, 1, 1], [], []>} : vector<4x32xf32>, vector<32x32xf32>, vector<4x32xf32> -> vector<4x32xf32>
    %41 = vector.extract_strided_slice %38 {offsets = [33, 0], sizes = [1, 32], strides = [1, 1]} : vector<34x32xf32> to vector<1x32xf32>
    %42 = vector.broadcast %41 : vector<1x32xf32> to vector<4x32xf32>
    %43 = arith.addf %40, %42 : vector<4x32xf32>
    %44 = vector.extract_strided_slice %38 {offsets = [32, 0], sizes = [1, 32], strides = [1, 1]} : vector<34x32xf32> to vector<1x32xf32>
    %45 = vector.broadcast %4 : vector<4x1xf32> to vector<4x32xf32>
    %46 = vector.broadcast %44 : vector<1x32xf32> to vector<4x32xf32>
    %47 = arith.mulf %45, %46 : vector<4x32xf32>
    %48 = arith.addf %43, %47 : vector<4x32xf32>
    %cst_22 = arith.constant 0.000000e+00 : f32
    %49 = vector.broadcast %cst_22 : f32 to vector<4x32xf32>
    %50 = arith.maximumf %48, %49 : vector<4x32xf32>
    %c0_23 = arith.constant 0 : index
    %c0_24 = arith.constant 0 : index
    %c0_25 = arith.constant 0 : index
    %51 = vector.load %arg7[%c0_23, %c0_24, %c0_25] : memref<4x65x32xf32, #tpu.memory_space<vmem>>, vector<4x65x32xf32>
    %52 = vector.extract_strided_slice %51 {offsets = [0, 0, 0], sizes = [1, 65, 32], strides = [1, 1, 1]} : vector<4x65x32xf32> to vector<1x65x32xf32>
    %53 = vector.shape_cast %52 : vector<1x65x32xf32> to vector<65x32xf32>
    %54 = vector.extract_strided_slice %53 {offsets = [0, 0], sizes = [32, 32], strides = [1, 1]} : vector<65x32xf32> to vector<32x32xf32>
    %cst_26 = arith.constant dense<0.000000e+00> : vector<4x32xf32>
    %55 = tpu.matmul %50, %54, %cst_26 {dimension_numbers = #tpu.dot_dimension_numbers<[1], [0], [0], [1], [0, 0, 1, 1], [], []>} : vector<4x32xf32>, vector<32x32xf32>, vector<4x32xf32> -> vector<4x32xf32>
    %56 = vector.extract_strided_slice %53 {offsets = [32, 0], sizes = [32, 32], strides = [1, 1]} : vector<65x32xf32> to vector<32x32xf32>
    %cst_27 = arith.constant dense<0.000000e+00> : vector<4x32xf32>
    %57 = tpu.matmul %5, %56, %cst_27 {dimension_numbers = #tpu.dot_dimension_numbers<[1], [0], [0], [1], [0, 0, 1, 1], [], []>} : vector<4x32xf32>, vector<32x32xf32>, vector<4x32xf32> -> vector<4x32xf32>
    %58 = arith.addf %55, %57 : vector<4x32xf32>
    %59 = vector.extract_strided_slice %53 {offsets = [64, 0], sizes = [1, 32], strides = [1, 1]} : vector<65x32xf32> to vector<1x32xf32>
    %60 = vector.broadcast %59 : vector<1x32xf32> to vector<4x32xf32>
    %61 = arith.addf %58, %60 : vector<4x32xf32>
    %62 = arith.negf %61 : vector<4x32xf32>
    %63 = math.exp %62 : vector<4x32xf32>
    %cst_28 = arith.constant 1.000000e+00 : f32
    %64 = vector.broadcast %cst_28 : f32 to vector<4x32xf32>
    %65 = arith.addf %64, %63 : vector<4x32xf32>
    %66 = arith.divf %64, %65 : vector<4x32xf32>
    %67 = vector.extract_strided_slice %51 {offsets = [1, 0, 0], sizes = [1, 65, 32], strides = [1, 1, 1]} : vector<4x65x32xf32> to vector<1x65x32xf32>
    %68 = vector.shape_cast %67 : vector<1x65x32xf32> to vector<65x32xf32>
    %69 = vector.extract_strided_slice %68 {offsets = [0, 0], sizes = [32, 32], strides = [1, 1]} : vector<65x32xf32> to vector<32x32xf32>
    %cst_29 = arith.constant dense<0.000000e+00> : vector<4x32xf32>
    %70 = tpu.matmul %50, %69, %cst_29 {dimension_numbers = #tpu.dot_dimension_numbers<[1], [0], [0], [1], [0, 0, 1, 1], [], []>} : vector<4x32xf32>, vector<32x32xf32>, vector<4x32xf32> -> vector<4x32xf32>
    %71 = vector.extract_strided_slice %68 {offsets = [32, 0], sizes = [32, 32], strides = [1, 1]} : vector<65x32xf32> to vector<32x32xf32>
    %cst_30 = arith.constant dense<0.000000e+00> : vector<4x32xf32>
    %72 = tpu.matmul %5, %71, %cst_30 {dimension_numbers = #tpu.dot_dimension_numbers<[1], [0], [0], [1], [0, 0, 1, 1], [], []>} : vector<4x32xf32>, vector<32x32xf32>, vector<4x32xf32> -> vector<4x32xf32>
    %73 = arith.addf %70, %72 : vector<4x32xf32>
    %74 = vector.extract_strided_slice %68 {offsets = [64, 0], sizes = [1, 32], strides = [1, 1]} : vector<65x32xf32> to vector<1x32xf32>
    %75 = vector.broadcast %74 : vector<1x32xf32> to vector<4x32xf32>
    %76 = arith.addf %73, %75 : vector<4x32xf32>
    %77 = arith.negf %76 : vector<4x32xf32>
    %78 = math.exp %77 : vector<4x32xf32>
    %cst_31 = arith.constant 1.000000e+00 : f32
    %79 = vector.broadcast %cst_31 : f32 to vector<4x32xf32>
    %80 = arith.addf %79, %78 : vector<4x32xf32>
    %81 = arith.divf %79, %80 : vector<4x32xf32>
    %82 = vector.extract_strided_slice %51 {offsets = [2, 0, 0], sizes = [1, 65, 32], strides = [1, 1, 1]} : vector<4x65x32xf32> to vector<1x65x32xf32>
    %83 = vector.shape_cast %82 : vector<1x65x32xf32> to vector<65x32xf32>
    %84 = vector.extract_strided_slice %83 {offsets = [0, 0], sizes = [32, 32], strides = [1, 1]} : vector<65x32xf32> to vector<32x32xf32>
    %cst_32 = arith.constant dense<0.000000e+00> : vector<4x32xf32>
    %85 = tpu.matmul %50, %84, %cst_32 {dimension_numbers = #tpu.dot_dimension_numbers<[1], [0], [0], [1], [0, 0, 1, 1], [], []>} : vector<4x32xf32>, vector<32x32xf32>, vector<4x32xf32> -> vector<4x32xf32>
    %86 = vector.extract_strided_slice %83 {offsets = [32, 0], sizes = [32, 32], strides = [1, 1]} : vector<65x32xf32> to vector<32x32xf32>
    %cst_33 = arith.constant dense<0.000000e+00> : vector<4x32xf32>
    %87 = tpu.matmul %5, %86, %cst_33 {dimension_numbers = #tpu.dot_dimension_numbers<[1], [0], [0], [1], [0, 0, 1, 1], [], []>} : vector<4x32xf32>, vector<32x32xf32>, vector<4x32xf32> -> vector<4x32xf32>
    %88 = arith.addf %85, %87 : vector<4x32xf32>
    %89 = vector.extract_strided_slice %83 {offsets = [64, 0], sizes = [1, 32], strides = [1, 1]} : vector<65x32xf32> to vector<1x32xf32>
    %90 = vector.broadcast %89 : vector<1x32xf32> to vector<4x32xf32>
    %91 = arith.addf %88, %90 : vector<4x32xf32>
    %92 = math.tanh %91 : vector<4x32xf32>
    %93 = vector.extract_strided_slice %51 {offsets = [3, 0, 0], sizes = [1, 65, 32], strides = [1, 1, 1]} : vector<4x65x32xf32> to vector<1x65x32xf32>
    %94 = vector.shape_cast %93 : vector<1x65x32xf32> to vector<65x32xf32>
    %95 = vector.extract_strided_slice %94 {offsets = [0, 0], sizes = [32, 32], strides = [1, 1]} : vector<65x32xf32> to vector<32x32xf32>
    %cst_34 = arith.constant dense<0.000000e+00> : vector<4x32xf32>
    %96 = tpu.matmul %50, %95, %cst_34 {dimension_numbers = #tpu.dot_dimension_numbers<[1], [0], [0], [1], [0, 0, 1, 1], [], []>} : vector<4x32xf32>, vector<32x32xf32>, vector<4x32xf32> -> vector<4x32xf32>
    %97 = vector.extract_strided_slice %94 {offsets = [32, 0], sizes = [32, 32], strides = [1, 1]} : vector<65x32xf32> to vector<32x32xf32>
    %cst_35 = arith.constant dense<0.000000e+00> : vector<4x32xf32>
    %98 = tpu.matmul %5, %97, %cst_35 {dimension_numbers = #tpu.dot_dimension_numbers<[1], [0], [0], [1], [0, 0, 1, 1], [], []>} : vector<4x32xf32>, vector<32x32xf32>, vector<4x32xf32> -> vector<4x32xf32>
    %99 = arith.addf %96, %98 : vector<4x32xf32>
    %100 = vector.extract_strided_slice %94 {offsets = [64, 0], sizes = [1, 32], strides = [1, 1]} : vector<65x32xf32> to vector<1x32xf32>
    %101 = vector.broadcast %100 : vector<1x32xf32> to vector<4x32xf32>
    %102 = arith.addf %99, %101 : vector<4x32xf32>
    %103 = arith.negf %102 : vector<4x32xf32>
    %104 = math.exp %103 : vector<4x32xf32>
    %cst_36 = arith.constant 1.000000e+00 : f32
    %105 = vector.broadcast %cst_36 : f32 to vector<4x32xf32>
    %106 = arith.addf %105, %104 : vector<4x32xf32>
    %107 = arith.divf %105, %106 : vector<4x32xf32>
    %108 = arith.mulf %81, %6 : vector<4x32xf32>
    %109 = arith.mulf %66, %92 : vector<4x32xf32>
    %110 = arith.addf %108, %109 : vector<4x32xf32>
    %111 = math.tanh %110 : vector<4x32xf32>
    %112 = arith.mulf %107, %111 : vector<4x32xf32>
    %c0_37 = arith.constant 0 : index
    %c0_38 = arith.constant 0 : index
    %113 = vector.load %arg13[%c0_37, %c0_38] : memref<4x32xf32, #tpu.memory_space<vmem>>, vector<4x32xf32>
    tpu.vector_store %arg13[%c0_37, %c0_38], %112 {strides = array<i32>} : memref<4x32xf32, #tpu.memory_space<vmem>>, vector<4x32xf32>,
    %c0_39 = arith.constant 0 : index
    %c0_40 = arith.constant 0 : index
    %114 = vector.load %arg14[%c0_39, %c0_40] : memref<4x32xf32, #tpu.memory_space<vmem>>, vector<4x32xf32>
    tpu.vector_store %arg14[%c0_39, %c0_40], %110 {strides = array<i32>} : memref<4x32xf32, #tpu.memory_space<vmem>>, vector<4x32xf32>,
    %c0_41 = arith.constant 0 : index
    %c0_42 = arith.constant 0 : index
    %115 = vector.load %arg11[%c0_41, %c0_42] : memref<4x32xf32, #tpu.memory_space<vmem>>, vector<4x32xf32>
    tpu.vector_store %arg11[%c0_41, %c0_42], %112 {strides = array<i32>} : memref<4x32xf32, #tpu.memory_space<vmem>>, vector<4x32xf32>,
    %c0_43 = arith.constant 0 : index
    %c0_44 = arith.constant 0 : index
    %116 = vector.load %arg12[%c0_43, %c0_44] : memref<4x32xf32, #tpu.memory_space<vmem>>, vector<4x32xf32>
    tpu.vector_store %arg12[%c0_43, %c0_44], %110 {strides = array<i32>} : memref<4x32xf32, #tpu.memory_space<vmem>>, vector<4x32xf32>,
    %c0_45 = arith.constant 0 : index
    %c0_46 = arith.constant 0 : index
    %117 = vector.load %arg8[%c0_45, %c0_46] : memref<33x1xf32, #tpu.memory_space<vmem>>, vector<33x1xf32>
    %118 = vector.extract_strided_slice %117 {offsets = [0, 0], sizes = [32, 1], strides = [1, 1]} : vector<33x1xf32> to vector<32x1xf32>
    %cst_47 = arith.constant dense<0.000000e+00> : vector<4x1xf32>
    %119 = tpu.matmul %112, %118, %cst_47 {dimension_numbers = #tpu.dot_dimension_numbers<[1], [0], [0], [1], [0, 0, 1, 1], [], []>} : vector<4x32xf32>, vector<32x1xf32>, vector<4x1xf32> -> vector<4x1xf32>
    %120 = vector.extract_strided_slice %117 {offsets = [32, 0], sizes = [1, 1], strides = [1, 1]} : vector<33x1xf32> to vector<1x1xf32>
    %121 = vector.broadcast %120 : vector<1x1xf32> to vector<4x1xf32>
    %122 = arith.addf %119, %121 : vector<4x1xf32>
    %c0_48 = arith.constant 0 : index
    %c0_49 = arith.constant 0 : index
    %c0_50 = arith.constant 0 : index
    %123 = vector.load %arg9[%c0_48, %c0_49, %c0_50] : memref<1x4x1xf32, #tpu.memory_space<vmem>>, vector<1x4x1xf32>
    %124 = vector.shape_cast %123 : vector<1x4x1xf32> to vector<4x1xf32>
    %125 = vector.shape_cast %122 : vector<4x1xf32> to vector<1x4x1xf32>
    tpu.vector_store %arg9[%c0_48, %c0_49, %c0_50], %125 {strides = array<i32>} : memref<1x4x1xf32, #tpu.memory_space<vmem>>, vector<1x4x1xf32>,
    return
  }
  func.func @transform_0(%arg0: i32) -> (i32, i32, i32) {
    %c0_i32 = arith.constant 0 : i32
    %c0_i32_0 = arith.constant 0 : i32
    %c0_i32_1 = arith.constant 0 : i32
    return %arg0, %c0_i32, %c0_i32_0 : i32, i32, i32
  }
  func.func @transform_1(%arg0: i32) -> (i32, i32, i32) {
    %c0_i32 = arith.constant 0 : i32
    %c0_i32_0 = arith.constant 0 : i32
    %c0_i32_1 = arith.constant 0 : i32
    %c0_i32_2 = arith.constant 0 : i32
    return %c0_i32, %c0_i32_0, %c0_i32_1 : i32, i32, i32
  }
  func.func @transform_2(%arg0: i32) -> (i32, i32) {
    %c0_i32 = arith.constant 0 : i32
    %c0_i32_0 = arith.constant 0 : i32
    %c0_i32_1 = arith.constant 0 : i32
    return %c0_i32, %c0_i32_0 : i32, i32
  }
  func.func @transform_3(%arg0: i32) -> (i32, i32) {
    %c0_i32 = arith.constant 0 : i32
    %c0_i32_0 = arith.constant 0 : i32
    %c0_i32_1 = arith.constant 0 : i32
    return %c0_i32, %c0_i32_0 : i32, i32
  }
  func.func @transform_4(%arg0: i32) -> (i32, i32) {
    %c0_i32 = arith.constant 0 : i32
    %c0_i32_0 = arith.constant 0 : i32
    %c0_i32_1 = arith.constant 0 : i32
    return %c0_i32, %c0_i32_0 : i32, i32
  }
  func.func @transform_5(%arg0: i32) -> (i32, i32) {
    %c0_i32 = arith.constant 0 : i32
    %c0_i32_0 = arith.constant 0 : i32
    %c0_i32_1 = arith.constant 0 : i32
    return %c0_i32, %c0_i32_0 : i32, i32
  }
  func.func @transform_6(%arg0: i32) -> (i32, i32, i32) {
    %c0_i32 = arith.constant 0 : i32
    %c0_i32_0 = arith.constant 0 : i32
    %c0_i32_1 = arith.constant 0 : i32
    %c0_i32_2 = arith.constant 0 : i32
    return %c0_i32, %c0_i32_0, %c0_i32_1 : i32, i32, i32
  }
  func.func @transform_7(%arg0: i32) -> (i32, i32) {
    %c0_i32 = arith.constant 0 : i32
    %c0_i32_0 = arith.constant 0 : i32
    %c0_i32_1 = arith.constant 0 : i32
    return %c0_i32, %c0_i32_0 : i32, i32
  }
  func.func @transform_8(%arg0: i32) -> (i32, i32, i32) {
    %c0_i32 = arith.constant 0 : i32
    %c0_i32_0 = arith.constant 0 : i32
    %c0_i32_1 = arith.constant 0 : i32
    return %arg0, %c0_i32, %c0_i32_0 : i32, i32, i32
  }
  func.func @transform_9(%arg0: i32) -> (i32, i32, i32) {
    %c0_i32 = arith.constant 0 : i32
    %c0_i32_0 = arith.constant 0 : i32
    %c0_i32_1 = arith.constant 0 : i32
    return %arg0, %c0_i32, %c0_i32_0 : i32, i32, i32
  }
  func.func @transform_10(%arg0: i32) -> (i32, i32) {
    %c0_i32 = arith.constant 0 : i32
    %c0_i32_0 = arith.constant 0 : i32
    %c0_i32_1 = arith.constant 0 : i32
    return %c0_i32, %c0_i32_0 : i32, i32
  }
  func.func @transform_11(%arg0: i32) -> (i32, i32) {
    %c0_i32 = arith.constant 0 : i32
    %c0_i32_0 = arith.constant 0 : i32
    %c0_i32_1 = arith.constant 0 : i32
    return %c0_i32, %c0_i32_0 : i32, i32
  }
}

</mosaic_0001>

<bundles_post_ra>
// kernel: attn_decoder_decode.1
= control target key start
LH: loop header
LB: loop body
LE: loop exit
PB: predicated region body
PF: predicated region fallthrough
CT: control target
= control target key end

     0   :  { %17 = vsyncpa [#allocation5], 0  ;;  %v1554_v3 = vmov 0.0|0.0   ;;  %vm40_vm0 = vcmask 257024   ;;  %vm1555_vm1 = vmmov 0   ;;  %v1556_v11 = vmov 0.0   ;;  %s1941_s0 = inlined_call_operand.vmem [shape: f32[1,4,1], index: 0, kind: input, shape index: {}]   ;;  %s1942_s1 = inlined_call_operand.vmem [shape: f32[4,6,32], index: 1, kind: input, shape index: {}]   ;;  %s1943_s2 = inlined_call_operand.vmem [shape: f32[4,32], index: 2, kind: input, shape index: {}]   ;;  %s1944_s3 = inlined_call_operand.vmem [shape: f32[4,32], index: 3, kind: input, shape index: {}]   ;;  %s1945_s4 = inlined_call_operand.vmem [shape: f32[66,6], index: 4, kind: input, shape index: {}]   ;;  %s1946_s5 = inlined_call_operand.vmem [shape: f32[34,32], index: 5, kind: input, shape index: {}]   ;;  %s1947_s6 = inlined_call_operand.vmem [shape: f32[4,65,32], index: 6, kind: input, shape index: {}]   ;;  %s1948_s7 = inlined_call_operand.vmem [shape: f32[33,1], index: 7, kind: input, shape index: {}]   ;;  %s1949_s8 = inlined_call_operand.vmem [shape: f32[1,4,1], index: 8, kind: output, shape index: {0}]   ;;  %s1950_s9 = inlined_call_operand.hbm [shape: f32[1,4,6], index: 9, kind: output, shape index: {1}]   ;;  %s1951_s10 = inlined_call_operand.hbm [shape: f32[4,32], index: 10, kind: output, shape index: {2}]   ;;  %s1952_s11 = inlined_call_operand.hbm [shape: f32[4,32], index: 11, kind: output, shape index: {3}]  }
   0x1   :  { %v55_v0 = vld [vmem:[%s1945_s4 + $0x20] sm:$0xff]  ;;  %v56_v1 = vld [vmem:[%s1945_s4 + $0x28] sm:$0xff]  ;;  %1384 = vmatprep.subr.bf16.mxu0 %v1554_v3  ;;  %1390 = vmatprep.subr.bf16.mxu1 %v1554_v3  ;;  %v57_v6 = vld [vmem:[%s1945_s4 + $0x30] sm:$0xff]  ;;  %v1557_v15 = vmov 0  }
   0x2   :  { %v51_v2 = vld [vmem:[%s1945_s4] sm:$0xff]  ;;  %v1385_v4 = vpack.c.bf16 %v56_v1, %v55_v0  ;;  %v52_v5 = vld [vmem:[%s1945_s4 + $0x8] sm:$0xff]  ;;  %v58_v7 = vld [vmem:[%s1945_s4 + $0x38] sm:$0xff]  ;;  %1260 = vmatprep.mubr.msk.f32.mxu0 %vm1555_vm1, %v1556_v11  ;;  %1271 = vmatprep.mubr.msk.f32.mxu1 %vm1555_vm1, %v1556_v11 }
   0x3   :  { %v1391_v8 = vpack.c.bf16 %v52_v5, %v51_v2  ;;  %v53_v9 = vld [vmem:[%s1945_s4 + $0x10] sm:$0xff]  ;;  %v54_v10 = vld [vmem:[%s1945_s4 + $0x18] sm:$0xff]  ;;  %v42_v12 = vld [vmem:[%s1944_s3] sm:$0xf]  ;;  %v1388_v13 = vpack.c.bf16 %v58_v7, %v57_v6  ;;  %1463 = vset.pattern.permute.xlu0 %v1557_v15 }
   0x4   :  { %1386 = vmatpush3.bf16.msra.mxu0 %v1385_v4  ;;  %43 = vst.msk [vmem:[#allocation3] sm:$0xf] %vm40_vm0, %v42_v12  ;;  %v39_v14 = vld [vmem:[%s1943_s2] sm:$0xf] }
   0x5   :  { %v44_v16 = vld [vmem:[%s1941_s0] sm:$0xf] }
   0x6   :  { %18 = vsyncpa [#allocation7], 0  ;;  %1392 = vmatpush3.bf16.msra.mxu1 %v1391_v8  ;;  %1387 = vmatprep.subr.bf16.mxu0 %v1554_v3  ;;  %v1394_v17 = vpack.c.bf16 %v54_v10, %v53_v9  ;;  %41 = vst.msk [vmem:[#allocation2] sm:$0xf] %vm40_vm0, %v39_v14  ;;  %vm60_vm2 = vcmask 261120   ;;  %v207_v20 = vlaneseq  ;;  %vm223_vm3 = vcmask 44032  }
   0x7   :  { %1393 = vmatprep.subr.bf16.mxu1 %v1554_v3  ;;  %214 = vperm.xlu0 %1463, %v44_v16   ;;  %v59_v23 = vld [vmem:[%s1945_s4 + $0x40] sm:$0x3]  ;;  %v298_v49 = vld [vmem:[%s1946_s5 + $0x8] sm:$0xff]  ;;  %v299_v53 = vld [vmem:[%s1946_s5 + $0x10] sm:$0xff]  ;;  %vm268_vm4 = vcmask 259072   ;;  %vm310_vm5 = vcmask 1041409  }
   0x8   :  { %1389 = vmatpush3.bf16.msra.mxu0 %v1388_v13  ;;  %v208_v21 = vshrl.u32 %v207_v20, 7  ;;  %v297_v48 = vld [vmem:[%s1946_s5] sm:$0xff]  ;;  %v300_v54 = vld [vmem:[%s1946_s5 + $0x18] sm:$0xff]  ;;  %v400_v58 = vld [vmem:[%s1947_s6 + $0x28] sm:$0xff]  ;;  %vm312_vm6 = vcmask 1042434   ;;  %vm314_vm7 = vcmask 1043459  }
   0x9   :  { %1396 = vmatprep.subr.bf16.mxu0 %v1554_v3  ;;  %v1397_v52 = vpack.c.bf16 %v298_v49, %v297_v48  ;;  %v1400_v56 = vpack.c.bf16 %v300_v54, %v299_v53  ;;  %v399_v57 = vld [vmem:[%s1947_s6 + $0x20] sm:$0xff]  ;;  %v48_v63 = vld [vmem:[%s1942_s1 + $0x8] sm:$0x3f]  ;;  %v49_v5 = vld [vmem:[%s1942_s1 + $0x10] sm:$0x3f]  ;;  %s1559_s4 = smov [#allocation4]  }
   0xa   :  { %1395 = vmatpush3.bf16.msra.mxu1 %v1394_v17  ;;  %v1678_v22 = vsub.s32 0, %v208_v21  ;;  %v1683_v24 = vsub.s32 1, %v208_v21  ;;  %v252_v47 = vsub.s32 2, %v208_v21  ;;  %v259_v51 = vsub.s32 3, %v208_v21  ;;  %v47_v60 = vld [vmem:[%s1942_s1] sm:$0x3f] }
   0xb   :  { %1402 = vmatprep.subr.bf16.mxu1 %v1554_v3  ;;  %v1666_v18 = vld [vmem:[#allocation3] sm:$0xf]  ;;  %v1403_v59 = vpack.c.bf16 %v400_v58, %v399_v57  ;;  %v50_v13 = vld [vmem:[%s1942_s1 + $0x18] sm:$0x3f]  ;;  %v401_v49 = vld [vmem:[%s1947_s6 + $0x30] sm:$0xff]  ;;  %s1135_s20 = sshll.u32 %s1559_s4, 4  ;;  %s1136_s20 = int_to_ptr.vmem [resolvable:$true] %s1135_s20 }
   0xc   :  { %1261 = vmatmul.mubr.msk.f32.vlgmr.msra.gmra.mrb[0].mxu0 %vm60_vm2, %v1666_v18  ;;  %v220_v25 = vrot.slane %v59_v23, %v1678_v22  ;;  %v210_v28 = vrot.slane %v59_v23, %v1683_v24  ;;  %v398_v53 = vld [vmem:[%s1947_s6 + $0x18] sm:$0xff] }
   0xd   :  { %v1670_v19 = vld [vmem:[#allocation2] sm:$0xf]  ;;  %1282 = vmatprep.mubr.msk.f32.mxu0 %vm1555_vm1, %v1556_v11  ;;  %1398 = vmatpush3.bf16.msra.mxu0 %v1397_v52  ;;  %v397_v52 = vld [vmem:[%s1947_s6 + $0x10] sm:$0xff]  ;;  %v410_v58 = vld [vmem:[%s1947_s6 + $0x78] sm:$0xff] }
   0xe   :  { %1272 = vmatmul.mubr.msk.f32.vlgmr.msra.gmra.mrb[0].mxu1 %vm60_vm2, %v1670_v19  ;;  %1399 = vmatprep.subr.bf16.mxu0 %v1554_v3  ;;  %v1412_v54 = vpack.c.bf16 %v398_v53, %v397_v52  ;;  %v1177_v52 = vld [vmem:[%s1947_s6 + $0x40] ss:$0 sm:$0xff] }
   0xf   :  { %1293 = vmatprep.mubr.msk.f32.mxu1 %vm1555_vm1, %v1556_v11  ;;  %1404 = vmatpush3.bf16.msra.mxu1 %v1403_v59  ;;  %v411_v59 = vld [vmem:[%s1947_s6 + $0x80] sm:$0xff] }
  0x10   :  { %1405 = vmatprep.subr.bf16.mxu1 %v1554_v3 }
  0x11   :  { %1401 = vmatpush3.bf16.msra.mxu0 %v1400_v56  ;;  %v409_v56 = vld [vmem:[%s1947_s6 + $0x70] sm:$0xff] }
  0x12   :  { %1408 = vmatprep.subr.bf16.mxu0 %v1554_v3 }
  0x86   :  { %v1686_v26 = vpop.permute.xlu0 %214 }
  0x87   :  { %v221_v33 = vmul.f32 %v220_v25, %v1686_v26 }
  0xdf   :  { %v130_v27 = vpop.f32.mrb[0].mxu0 }
  0xe0   :  { %v1262_v30 = vpop.f32.mrb[1].mxu0 }
  0xe1   :  { %v203_v29 = vpop.f32.mrb[0].mxu1 }
  0xe2   :  { %v204_v31 = vadd.f32 %v203_v29, %v130_v27  ;;  %v1273_v32 = vpop.f32.mrb[1].mxu1 }
  0xe4   :  { %v211_v34 = vadd.f32 %v210_v28, %v204_v31 }
  0xe6   :  { %v222_v35 = vadd.f32 %v221_v33, %v211_v34 }
  0xe8   :  { %v224_v36 = vsel %vm223_vm3, %v222_v35, -inf }
  0xe9   :  { %225 = vmax.xlane.f32.xlu0 %v224_v36 }
 0x176   :  { %v226_v37 = vpop.xlane.xlu0 %225 }
 0x177   :  { %v227_v38 = vsub.f32 %v222_v35, %v226_v37 }
 0x179   :  { %v228_v39 = vmul.f32 1.442695, %v227_v38 }
 0x17b   :  { %1464 = vpow2.f32 %v228_v39 }
 0x185   :  { %v1465_v40 = vpop.eup %1464 }
 0x186   :  { %v230_v41 = vsel %vm223_vm3, %v1465_v40, 0.0 }
 0x187   :  { %231 = vadd.xlane.f32.xlu1 %v230_v41  ;;  %v396_v41 = vld [vmem:[%s1947_s6 + $0x8] sm:$0xff] }
 0x214   :  { %v232_v42 = vpop.xlane.xlu1 %231 }
 0x215   :  { %1466 = vrcp.f32 %v232_v42 }
 0x21f   :  { %v1467_v43 = vpop.eup %1466 }
 0x220   :  { %v234_v44 = vmul.f32 %v1467_v43, %v1465_v40  ;;  %v395_v40 = vld [vmem:[%s1947_s6] sm:$0xff] }
 0x222   :  { %235 = vst.msk [vmem:[#allocation4] sm:$0xf] %vm223_vm3, %v234_v44  ;;  %v239_v45 = vrot.slane %v234_v44, %v1678_v22  ;;  %v246_v46 = vrot.slane %v234_v44, %v1683_v24  ;;  %v253_v50 = vrot.slane %v234_v44, %v252_v47  ;;  %v260_v55 = vrot.slane %v234_v44, %v259_v51 }
 0x224   :  { %241 = vbcast.lane.b32.xlu1 %v239_v45, 256 }
 0x228   :  { %248 = vbcast.lane.b32.xlu1 %v246_v46, 256  ;;  %v1409_v46 = vpack.c.bf16 %v396_v41, %v395_v40 }
 0x22c   :  { %255 = vbcast.lane.b32.xlu1 %v253_v50, 256  ;;  %v402_v50 = vld [vmem:[%s1947_s6 + $0x38] sm:$0xff] }
 0x22d   :  { %v1406_v51 = vpack.c.bf16 %v402_v50, %v401_v49  ;;  %v1046_v50 = vld [vmem:[%s1948_s7 + $0x18] sm:$0xff] }
 0x22f   :  { %1407 = vmatpush3.bf16.msra.mxu1 %v1406_v51 }
 0x230   :  { %262 = vbcast.lane.b32.xlu1 %v260_v55, 256  ;;  %1414 = vmatprep.subr.bf16.mxu1 %v1554_v3  ;;  %v408_v55 = vld [vmem:[%s1947_s6 + $0x68] sm:$0xff] }
 0x231   :  { %v1415_v57 = vpack.c.bf16 %v409_v56, %v408_v55 }
 0x232   :  { %1294 = vmatmul.mubr.msk.f32.vlgmr.msra.gmra.mrb[2].mxu1 %vm60_vm2, %v1670_v19 }
 0x233   :  { %1416 = vmatpush3.bf16.msra.mxu1 %v1415_v57  ;;  %1315 = vmatprep.mubr.msk.f32.mxu1 %vm1555_vm1, %v1556_v11 }
 0x234   :  { %1417 = vmatprep.subr.bf16.mxu1 %v1554_v3 }
 0x296   :  { %v242_v61 = vpop.permute.xlu1 %241 }
 0x297   :  { %v264_v62 = vmul.f32 %v242_v61, %v47_v60  ;;  %v1418_v60 = vpack.c.bf16 %v411_v59, %v410_v58  ;;  %v417_v61 = vld [vmem:[%s1947_s6 + $0xb0] sm:$0xff]  ;;  %v1181_v58 = vld [vmem:[%s1947_s6 + $0x88] ss:$0 sm:$0xff] }
 0x299   :  { %v269_v0 = vsel %vm268_vm4, %v264_v62, 0.0  ;;  %1419 = vmatpush3.bf16.msra.mxu1 %v1418_v60  ;;  %v418_v62 = vld [vmem:[%s1947_s6 + $0xb8] sm:$0xff] }
 0x29a   :  { %v270_v1 = vrot.slane %v269_v0, 4  ;;  %v249_v2 = vpop.permute.xlu1 %248  ;;  %1426 = vmatprep.subr.bf16.mxu1 %v1554_v3 }
 0x29b   :  { %v265_v4 = vmul.f32 %v249_v2, %v48_v63  ;;  %v1427_v63 = vpack.c.bf16 %v418_v62, %v417_v61 }
 0x29c   :  { %v271_v7 = vadd.f32 %v270_v1, %v269_v0  ;;  %1316 = vmatmul.mubr.msk.f32.vlgmr.msra.gmra.mrb[4].mxu1 %vm60_vm2, %v1670_v19  ;;  %v419_v0 = vld [vmem:[%s1947_s6 + $0xc0] sm:$0xff]  ;;  %v420_v1 = vld [vmem:[%s1947_s6 + $0xc8] sm:$0xff] }
 0x29d   :  { %v276_v6 = vsel %vm268_vm4, %v265_v4, 0.0  ;;  %1428 = vmatpush3.bf16.msra.mxu1 %v1427_v63  ;;  %1337 = vmatprep.mubr.msk.f32.mxu1 %vm1555_vm1, %v1556_v11  ;;  %v1430_v2 = vpack.c.bf16 %v420_v1, %v419_v0  ;;  %v426_v4 = vld [vmem:[%s1947_s6 + $0xf8] sm:$0xff]  ;;  %v1185_v63 = vld [vmem:[%s1947_s6 + $0xd0] ss:$0 sm:$0xff] }
 0x29e   :  { %v277_v8 = vrot.slane %v276_v6, 4  ;;  %v256_v9 = vpop.permute.xlu1 %255  ;;  %v272_v15 = vrot.slane %v271_v7, 2  ;;  %1429 = vmatprep.subr.bf16.mxu1 %v1554_v3 }
 0x29f   :  { %v266_v10 = vmul.f32 %v256_v9, %v49_v5  ;;  %v427_v5 = vld [vmem:[%s1947_s6 + $0x100] sm:$0xff] }
 0x2a0   :  { %v278_v12 = vadd.f32 %v277_v8, %v276_v6  ;;  %v273_v28 = vadd.f32 %v272_v15, %v271_v7  ;;  %v1439_v6 = vpack.c.bf16 %v427_v5, %v426_v4  ;;  %v428_v7 = vld [vmem:[%s1947_s6 + $0x108] sm:$0xff]  ;;  %v429_v8 = vld [vmem:[%s1947_s6 + $0x110] sm:$0xff] }
 0x2a1   :  { %v283_v14 = vsel %vm268_vm4, %v266_v10, 0.0  ;;  %1431 = vmatpush3.bf16.msra.mxu1 %v1430_v2  ;;  %v1442_v9 = vpack.c.bf16 %v429_v8, %v428_v7  ;;  %v301_v10 = vld [vmem:[%s1946_s5 + $0x20] sm:$0x3]  ;;  %v1188_v7 = vld [vmem:[%s1947_s6 + $0x118] ss:$0 sm:$0xff] }
 0x2a2   :  { %v279_v16 = vrot.slane %v278_v12, 2  ;;  %v284_v17 = vrot.slane %v283_v14, 4  ;;  %v263_v20 = vpop.permute.xlu1 %262  ;;  %v274_v34 = vrot.slane %v273_v28, 1  ;;  %1438 = vmatprep.subr.bf16.mxu1 %v1554_v3 }
 0x2a3   :  { %v267_v21 = vmul.f32 %v263_v20, %v50_v13  ;;  %v305_v13 = vrot.slane %v301_v10, %v1683_v24  ;;  %v405_v20 = vld [vmem:[%s1947_s6 + $0x50] sm:$0xff]  ;;  %v407_v24 = vld [vmem:[%s1947_s6 + $0x60] sm:$0xff] }
 0x2a4   :  { %v280_v23 = vadd.f32 %v279_v16, %v278_v12  ;;  %v285_v25 = vadd.f32 %v284_v17, %v283_v14  ;;  %v275_v42 = vadd.f32 %v274_v34, %v273_v28  ;;  %1338 = vmatmul.mubr.msk.f32.vlgmr.msra.gmra.mrb[6].mxu1 %vm60_vm2, %v1670_v19  ;;  %v391_v12 = vrot.slane %v301_v10, %v1678_v22  ;;  %v406_v22 = vld [vmem:[%s1947_s6 + $0x58] sm:$0xff]  ;;  %v423_v34 = vld [vmem:[%s1947_s6 + $0xe0] sm:$0xff] }
 0x2a5   :  { %v290_v27 = vsel %vm268_vm4, %v267_v21, 0.0  ;;  %1440 = vmatpush3.bf16.msra.mxu1 %v1439_v6  ;;  %1359 = vmatprep.mubr.msk.f32.mxu1 %vm1555_vm1, %v1556_v11  ;;  %v414_v28 = vld [vmem:[%s1947_s6 + $0x98] sm:$0xff] }
 0x2a6   :  { %v286_v29 = vrot.slane %v285_v25, 2  ;;  %v291_v30 = vrot.slane %v290_v27, 4  ;;  %v281_v31 = vrot.slane %v280_v23, 1  ;;  %1441 = vmatprep.subr.bf16.mxu1 %v1554_v3  ;;  %v392_v15 = vmul.f32 %v391_v12, %v1686_v26 }
 0x2a7   :  { %v1424_v26 = vpack.c.bf16 %v407_v24, %v406_v22 }
 0x2a8   :  { %v287_v32 = vadd.f32 %v286_v29, %v285_v25  ;;  %v292_v33 = vadd.f32 %v291_v30, %v290_v27  ;;  %v282_v37 = vadd.f32 %v281_v31, %v280_v23  ;;  %v413_v27 = vld [vmem:[%s1947_s6 + $0x90] sm:$0xff]  ;;  %v415_v30 = vld [vmem:[%s1947_s6 + $0xa0] sm:$0xff]  ;;  %v416_v31 = vld [vmem:[%s1947_s6 + $0xa8] sm:$0xff] }
 0x2a9   :  { %1443 = vmatpush3.bf16.msra.mxu1 %v1442_v9  ;;  %v1433_v29 = vpack.c.bf16 %v414_v28, %v413_v27 }
 0x2aa   :  { %v288_v35 = vrot.slane %v287_v32, 1  ;;  %v293_v36 = vrot.slane %v292_v33, 2  ;;  %v311_v45 = vsel %vm310_vm5, %v282_v37, %v275_v42  ;;  %1450 = vmatprep.subr.bf16.mxu1 %v1554_v3  ;;  %v425_v37 = vld [vmem:[%s1947_s6 + $0xf0] sm:$0xff] }
 0x2ac   :  { %v294_v38 = vadd.f32 %v293_v36, %v292_v33  ;;  %v289_v39 = vadd.f32 %v288_v35, %v287_v32  ;;  %1360 = vmatmul.mubr.msk.f32.vlgmr.msra.gmra.mrb[8].mxu1 %vm60_vm2, %v1670_v19  ;;  %v404_v19 = vld [vmem:[%s1947_s6 + $0x48] sm:$0xff]  ;;  %v1436_v32 = vpack.c.bf16 %v416_v31, %v415_v30  ;;  %v422_v33 = vld [vmem:[%s1947_s6 + $0xd8] sm:$0xff] }
 0x2ad   :  { %1381 = vmatprep.mubr.msk.f32.mxu1 %vm1555_vm1, %v1556_v11  ;;  %v1421_v23 = vpack.c.bf16 %v405_v20, %v404_v19  ;;  %v1445_v35 = vpack.c.bf16 %v423_v34, %v422_v33  ;;  %v424_v36 = vld [vmem:[%s1947_s6 + $0xe8] sm:$0xff]  ;;  %s1558_s6 = smov [#allocation6]  }
 0x2ae   :  { %v295_v43 = vrot.slane %v294_v38, 1  ;;  %v313_v47 = vsel %vm312_vm6, %v289_v39, %v311_v45  ;;  %s1145_s3 = sshll.u32 %s1558_s6, 4  ;;  %s1146_s3 = int_to_ptr.vmem [resolvable:$true] %s1145_s3 }
 0x2af   :  { %s1484_s21 = scalar_lea.vmem %s1146_s3, 64  ;;  %p1489_p1 = scmp.lt.s32.totalorder %s1146_s3, %s1146_s3 }
 0x2b0   :  { %v296_v44 = vadd.f32 %v295_v43, %v294_v38  ;;  %v1448_v38 = vpack.c.bf16 %v425_v37, %v424_v36  ;;  %p1485_p0 = scmp.ne.s32.totalorder %s1146_s3, %s1484_s21  ;;  %p1490_p2 = scmp.lt.s32.totalorder %s1484_s21, %s1484_s21 }
 0x2b2   :  { %v315_v48 = vsel %vm314_vm7, %v296_v44, %v313_v47  ;;  %v1043_v47 = vld [vmem:[%s1948_s7] sm:$0xff]  ;;  %p1491_p3 = por %p1490_p2, %p1489_p1 }
 0x2b3   :  { %1283 = vmatmul.mubr.msk.f32.vlgmr.msra.gmra.mrb[2].mxu0 %vm60_vm2, %v315_v48  ;;  %v1045_v48 = vld [vmem:[%s1948_s7 + $0x10] sm:$0xff] }
 0x2b4   :  { %1410 = vmatpush3.bf16.msra.mxu0 %v1409_v46  ;;  %1304 = vmatprep.mubr.msk.f32.mxu0 %vm1555_vm1, %v1556_v11  ;;  %v1454_v51 = vpack.c.bf16 %v1046_v50, %v1045_v48  ;;  %p1492_p4 = pnand %p1491_p3, %p1485_p0 }
 0x2b5   :  { %1411 = vmatprep.subr.bf16.mxu0 %v1554_v3 }
 0x2b8   :  { %1413 = vmatpush3.bf16.msra.mxu0 %v1412_v54 }
 0x2b9   :  { %1420 = vmatprep.subr.bf16.mxu0 %v1554_v3 }
 0x305   :  { %v497_v39 = vpop.f32.mrb[2].mxu1 }
 0x306   :  { %v1295_v40 = vpop.f32.mrb[3].mxu1 }
 0x36f   :  { %v651_v41 = vpop.f32.mrb[4].mxu1 }
 0x370   :  { %v1317_v42 = vpop.f32.mrb[5].mxu1 }
 0x377   :  { %v802_v43 = vpop.f32.mrb[6].mxu1 }
 0x378   :  { %v1339_v44 = vpop.f32.mrb[7].mxu1 }
 0x37f   :  { %v948_v45 = vpop.f32.mrb[8].mxu1 }
 0x380   :  { %v1361_v46 = vpop.f32.mrb[9].mxu1 }
 0x386   :  { %v384_v14 = vpop.f32.mrb[2].mxu0 }
 0x387   :  { %v385_v16 = vadd.f32 %v384_v14, %v305_v13  ;;  %v1284_v17 = vpop.f32.mrb[3].mxu0 }
 0x389   :  { %v393_v21 = vadd.f32 %v392_v15, %v385_v16 }
 0x38b   :  { %v394_v25 = vmax.f32 %v393_v21, 0.0 }
 0x38d   :  { %1305 = vmatmul.mubr.msk.f32.vlgmr.msra.gmra.mrb[4].mxu0 %vm60_vm2, %v394_v25 }
 0x38e   :  { %1422 = vmatpush3.bf16.msra.mxu0 %v1421_v23  ;;  %1326 = vmatprep.mubr.msk.f32.mxu0 %vm1555_vm1, %v1556_v11 }
 0x38f   :  { %1423 = vmatprep.subr.bf16.mxu0 %v1554_v3 }
 0x392   :  { %1425 = vmatpush3.bf16.msra.mxu0 %v1424_v26 }
 0x393   :  { %1432 = vmatprep.subr.bf16.mxu0 %v1554_v3 }
 0x395   :  { %1327 = vmatmul.mubr.msk.f32.vlgmr.msra.gmra.mrb[6].mxu0 %vm60_vm2, %v394_v25 }
 0x396   :  { %1434 = vmatpush3.bf16.msra.mxu0 %v1433_v29  ;;  %1348 = vmatprep.mubr.msk.f32.mxu0 %vm1555_vm1, %v1556_v11 }
 0x397   :  { %1435 = vmatprep.subr.bf16.mxu0 %v1554_v3 }
 0x39a   :  { %1437 = vmatpush3.bf16.msra.mxu0 %v1436_v32 }
 0x39b   :  { %1444 = vmatprep.subr.bf16.mxu0 %v1554_v3 }
 0x39d   :  { %1349 = vmatmul.mubr.msk.f32.vlgmr.msra.gmra.mrb[8].mxu0 %vm60_vm2, %v394_v25 }
 0x39e   :  { %1446 = vmatpush3.bf16.msra.mxu0 %v1445_v35  ;;  %1370 = vmatprep.mubr.msk.f32.mxu0 %vm1555_vm1, %v1556_v11  ;;  %v1044_v11 = vld [vmem:[%s1948_s7 + $0x8] sm:$0xff] }
 0x39f   :  { %1447 = vmatprep.subr.bf16.mxu0 %v1554_v3  ;;  %v1451_v49 = vpack.c.bf16 %v1044_v11, %v1043_v47 }
 0x3a1   :  { %1452 = vmatpush3.bf16.msra.mxu1 %v1451_v49 }
 0x3a2   :  { %1449 = vmatpush3.bf16.msra.mxu0 %v1448_v38  ;;  %1453 = vmatprep.subr.bf16.mxu1 %v1554_v3 }
 0x3a5   :  { %1371 = vmatmul.mubr.msk.f32.vlgmr.msra.gmra.mrb[10].mxu0 %vm60_vm2, %v394_v25  ;;  %1455 = vmatpush3.bf16.msra.mxu1 %v1454_v51 }
 0x460   :  { %v570_v53 = vpop.f32.mrb[4].mxu0 }
 0x461   :  { %v571_v54 = vadd.f32 %v570_v53, %v497_v39  ;;  %v1306_v55 = vpop.f32.mrb[5].mxu0 }
 0x463   :  { %v578_v56 = vadd.f32 %v1177_v52, %v571_v54 }
 0x465   :  { %v1178_v57 = vmul.f32 -1.442695, %v578_v56 }
 0x467   :  { %1468 = vpow2.f32 %v1178_v57 }
 0x468   :  { %v721_v59 = vpop.f32.mrb[6].mxu0 }
 0x469   :  { %v722_v60 = vadd.f32 %v721_v59, %v651_v41  ;;  %v1328_v61 = vpop.f32.mrb[7].mxu0 }
 0x46b   :  { %v729_v62 = vadd.f32 %v1181_v58, %v722_v60 }
 0x46d   :  { %v1182_v3 = vmul.f32 -1.442695, %v729_v62 }
 0x46f   :  { %1470 = vpow2.f32 %v1182_v3 }
 0x470   :  { %v872_v0 = vpop.f32.mrb[8].mxu0 }
 0x471   :  { %v1469_v1 = vpop.eup %1468  ;;  %v873_v2 = vadd.f32 %v872_v0, %v802_v43  ;;  %v1350_v4 = vpop.f32.mrb[9].mxu0 }
 0x472   :  { %v582_v5 = vadd.f32 1.0, %v1469_v1 }
 0x473   :  { %v880_v6 = vadd.f32 %v1185_v63, %v873_v2 }
 0x474   :  { %1472 = vrcp.f32 %v582_v5 }
 0x475   :  { %1474 = vtanh.f32 %v880_v6 }
 0x478   :  { %v1018_v8 = vpop.f32.mrb[10].mxu0 }
 0x479   :  { %v1471_v9 = vpop.eup %1470  ;;  %v1019_v10 = vadd.f32 %v1018_v8, %v948_v45  ;;  %v1372_v12 = vpop.f32.mrb[11].mxu0 }
 0x47a   :  { %v733_v13 = vadd.f32 1.0, %v1471_v9 }
 0x47b   :  { %v1026_v14 = vadd.f32 %v1188_v7, %v1019_v10 }
 0x47c   :  { %1476 = vrcp.f32 %v733_v13 }
 0x47d   :  { %v1189_v15 = vmul.f32 -1.442695, %v1026_v14 }
 0x47e   :  { %v1473_v16 = vpop.eup %1472 }
 0x47f   :  { %v1475_v17 = vpop.eup %1474  ;;  %1478 = vpow2.f32 %v1189_v15 }
 0x480   :  { %v1034_v19 = vmul.f32 %v1475_v17, %v1473_v16 }
 0x486   :  { %v1477_v20 = vpop.eup %1476 }
 0x487   :  { %v1033_v21 = vmul.f32 %v1477_v20, %v1666_v18 }
 0x489   :  { %v1479_v23 = vpop.eup %1478  ;;  %v1035_v25 = vadd.f32 %v1034_v19, %v1033_v21 }
 0x48a   :  { %v1030_v22 = vadd.f32 1.0, %v1479_v23 }
 0x48b   :  { %1480 = vtanh.f32 %v1035_v25  ;;  %1040 = vst.msk [vmem:[#allocation3] sm:$0xf] %vm40_vm0, %v1035_v25  ;;  %1042 = vst.msk [vmem:[#allocation8] sm:$0xf] %vm40_vm0, %v1035_v25 }
 0x48c   :  { %1482 = vrcp.f32 %v1030_v22 }
 0x495   :  { %v1481_v24 = vpop.eup %1480 }
 0x496   :  { %v1483_v26 = vpop.eup %1482 }
 0x497   :  { %v1037_v27 = vmul.f32 %v1483_v26, %v1481_v24 }
 0x499   :  { %1039 = vst.msk [vmem:[#allocation2] sm:$0xf] %vm40_vm0, %v1037_v27  ;;  %1382 = vmatmul.mubr.msk.f32.vlgmr.msra.gmra.mrb[10].mxu1 %vm60_vm2, %v1037_v27  ;;  %1041 = vst.msk [vmem:[#allocation6] sm:$0xf] %vm40_vm0, %v1037_v27 }
 0x49a   :  { %1495 = shalt.err (!%p1492_p4)
}
 0x49b   :  { %s1496_s24 = scalar_lea.hbm %s1951_s10, 64 }
 0x49c   :  { %p1497_p5 = scmp.ne.s32.totalorder %s1951_s10, %s1496_s24  ;;  %p1500_p6 = scmp.lt.u32.totalorder %s1496_s24, %s1951_s10 }
 0x49e   :  { %p1502_p7 = pnand %p1500_p6, %p1497_p5 }
 0x4a0   :  { %1505 = shalt.err (!%p1502_p7)
}
 0x4a1   :  { %1148 = dma.vmem_to_hbm [thread:$0]  %s1146_s3, 64, %s1951_s10, [#allocation7]  }
 0x4a2   :  { %s1506_s12 = scalar_lea.vmem %s1136_s20, 64  ;;  %p1511_p9 = scmp.lt.s32.totalorder %s1136_s20, %s1136_s20 }
 0x4a3   :  { %p1507_p8 = scmp.ne.s32.totalorder %s1136_s20, %s1506_s12  ;;  %p1512_p10 = scmp.lt.s32.totalorder %s1506_s12, %s1506_s12 }
 0x4a5   :  { %p1513_p11 = por %p1512_p10, %p1511_p9 }
 0x4a7   :  { %p1514_p12 = pnand %p1513_p11, %p1507_p8 }
 0x4a9   :  { %1517 = shalt.err (!%p1514_p12)
}
 0x4aa   :  { %s1518_s14 = scalar_lea.hbm %s1950_s9, 64 }
 0x4ab   :  { %p1519_p13 = scmp.ne.s32.totalorder %s1950_s9, %s1518_s14  ;;  %p1522_p0 = scmp.lt.u32.totalorder %s1518_s14, %s1950_s9 }
 0x4ad   :  { %p1524_p1 = pnand %p1522_p0, %p1519_p13 }
 0x4af   :  { %1527 = shalt.err (!%p1524_p1)
}
 0x4b0   :  { %1138 = dma.vmem_to_hbm [thread:$0]  %s1136_s20, 64, %s1950_s9, [#allocation5]  }
 0x4b1   :  { %s1560_s19 = smov [#allocation8]  }
 0x4b2   :  { %s1155_s0 = sshll.u32 %s1560_s19, 4  ;;  %s1156_s0 = int_to_ptr.vmem [resolvable:$true] %s1155_s0 }
 0x4b3   :  { %s1528_s2 = scalar_lea.vmem %s1156_s0, 64  ;;  %p1533_p3 = scmp.lt.s32.totalorder %s1156_s0, %s1156_s0 }
 0x4b4   :  { %p1529_p2 = scmp.ne.s32.totalorder %s1156_s0, %s1528_s2  ;;  %p1534_p4 = scmp.lt.s32.totalorder %s1528_s2, %s1528_s2 }
 0x4b6   :  { %p1535_p5 = por %p1534_p4, %p1533_p3 }
 0x4b8   :  { %p1536_p6 = pnand %p1535_p5, %p1529_p2 }
 0x4ba   :  { %1539 = shalt.err (!%p1536_p6)
}
 0x4bb   :  { %s1540_s4 = scalar_lea.hbm %s1952_s11, 64 }
 0x4bc   :  { %p1541_p7 = scmp.ne.s32.totalorder %s1952_s11, %s1540_s4  ;;  %p1544_p8 = scmp.lt.u32.totalorder %s1540_s4, %s1952_s11 }
 0x4be   :  { %p1546_p9 = pnand %p1544_p8, %p1541_p7 }
 0x4c0   :  { %1549 = shalt.err (!%p1546_p9)
}
 0x4c1   :  { %1158 = dma.vmem_to_hbm [thread:$0]  %s1156_s0, 64, %s1952_s11, [#allocation7]   ;;  %v1190_v18 = vld [vmem:[%s1948_s7 + $0x20] ss:$0 sm:$0xff]  ;;  %vm1125_vm8 = vcmask 3072  }
 0x56c   :  { %v1121_v28 = vpop.f32.mrb[10].mxu1 }
 0x56d   :  { %v1122_v29 = vadd.f32 %v1190_v18, %v1121_v28  ;;  %v1383_v30 = vpop.f32.mrb[11].mxu1 }
 0x56f   :  { %1126 = vst.msk [vmem:[%s1949_s8] sm:$0xf] %vm1125_vm8, %v1122_v29 }
 0x570   :  { %1550 = dma.done.wait [#allocation5], 64  }
 0x571   :  { %1551 = vsyncadd [#allocation5], 4294967232 }
 0x572   :  { %1552 = dma.done.wait [#allocation7], 128  }
 0x573   :  { %1553 = vsyncadd [#allocation7], 4294967168 }
 0x574   :  { %1170 = vsyncpa [#allocation5], 1 }
 0x575   :  { %1171 = vsyncpa [#allocation7], 1 }

</bundles_post_ra>
